<compile_context>
chip_gen: v7x
topology: tpu7x:2x2x1
jax: 0.10.0
libtpu: 0.0.40
codegen_flags: <defaults>
</compile_context>

<pallas_src>
import numpy as np
import jax
import jax.numpy as jnp
from jax.experimental import pallas as pl
from jax.experimental.pallas import tpu as pltpu

_LANES = 128


def _copy_kernel(x_ref, o_ref):
    # Pure data movement: the reshape itself is metadata handled in the wrapper.
    o_ref[...] = x_ref[...]


def _pick_row_tile(rows, max_tile=2048):
    """Largest power-of-two row tile (multiple of 8) that divides `rows`.

    Falls back to a single full-array block (always a legal BlockSpec) when no
    such tile exists (e.g. rows < 8 or rows not a multiple of 8).
    """
    for t in (2048, 1024, 512, 256, 128, 64, 32, 16, 8):
        if t <= rows and rows % t == 0:
            return t
    return rows


def reshape_forward(x, out_shape):
    """Pallas equivalent of Reshape(out_shape).forward(x) == x.view(-1, *out_shape)."""
    out_shape = tuple(int(d) for d in out_shape)
    total = int(np.prod(x.shape))
    inner = int(np.prod(out_shape)) if out_shape else 1
    assert total % inner == 0, "input size not divisible by prod(out_shape)"
    lead = total // inner
    result_shape = (lead,) + out_shape

    # Lane-dense 2D working layout for the copy kernel.
    if total % _LANES == 0:
        rows, cols = total // _LANES, _LANES
    else:
        # Single full-array block: block dims == array dims, so no (8,128)
        # divisibility constraint applies.
        rows, cols = 1, total
    work = x.reshape(rows, cols)  # metadata-only in XLA (row-major)

    tile = _pick_row_tile(rows)
    grid = (rows // tile,)

    out2d = pl.pallas_call(
        _copy_kernel,
        out_shape=jax.ShapeDtypeStruct((rows, cols), x.dtype),
        grid=grid,
        in_specs=[pl.BlockSpec((tile, cols), lambda i: (i, 0))],
        out_specs=pl.BlockSpec((tile, cols), lambda i: (i, 0)),
        compiler_params=pltpu.CompilerParams(
            dimension_semantics=("parallel",)),
    )(work)

    # The actual "view": free metadata reshape of the kernel output.
    return out2d.reshape(result_shape)


if __name__ == "__main__":
    key = jax.random.PRNGKey(0)

    # Small shapes consistent with the module: batch=2, channels=4, spatial=16x16.
    # Reshape((4, 256)):  (2, 4, 16, 16) -> view(-1, 4, 256) = (2, 4, 256)
    x = jax.random.normal(key, (2, 4, 16, 16), jnp.float32)
    out_shape = (4, 256)

    out = jax.block_until_ready(reshape_forward(x, out_shape))
    ref = jnp.reshape(x, (-1,) + out_shape)
    assert out.shape == ref.shape, (out.shape, ref.shape)
    assert jnp.array_equal(out, ref), "mismatch vs x.view(-1, *out_shape)"

    # Second case exercising the non-128-divisible fallback path.
    x2 = jax.random.normal(jax.random.PRNGKey(1), (3, 5, 7), jnp.float32)
    out2 = jax.block_until_ready(reshape_forward(x2, (7, 5)))
    assert jnp.array_equal(out2, jnp.reshape(x2, (-1, 7, 5))), "fallback mismatch"

    print("KERNEL_OK")
</pallas_src>

<mosaic_0001>
module attributes {stable_mosaic.version = 11 : i64} {
  func.func @_copy_kernel(%arg0: i32, %arg1: memref<16x128xf32, #tpu.memory_space<vmem>>, %arg2: memref<16x128xf32, #tpu.memory_space<vmem>>) attributes {dimension_semantics = [#tpu.dimension_semantics<parallel>], iteration_bounds = array<i64: 1>, scalar_prefetch = 0 : i64, scratch_operands = 0 : i64, tpu.core_type = #tpu.core_type<tc>, window_params = [{transform_indices = @transform_0, window_bounds = array<i64: 16, 128>}, {transform_indices = @transform_1, window_bounds = array<i64: 16, 128>}]} {
    %c0 = arith.constant 0 : index
    %c0_0 = arith.constant 0 : index
    %0 = vector.load %arg1[%c0, %c0_0] : memref<16x128xf32, #tpu.memory_space<vmem>>, vector<16x128xf32>
    %c0_1 = arith.constant 0 : index
    %c0_2 = arith.constant 0 : index
    %1 = vector.load %arg2[%c0_1, %c0_2] : memref<16x128xf32, #tpu.memory_space<vmem>>, vector<16x128xf32>
    tpu.vector_store %arg2[%c0_1, %c0_2], %0 {strides = array<i32>} : memref<16x128xf32, #tpu.memory_space<vmem>>, vector<16x128xf32>,
    return
  }
  func.func @transform_0(%arg0: i32) -> (i32, i32) {
    %c0_i32 = arith.constant 0 : i32
    %c0_i32_0 = arith.constant 0 : i32
    return %arg0, %c0_i32 : i32, i32
  }
  func.func @transform_1(%arg0: i32) -> (i32, i32) {
    %c0_i32 = arith.constant 0 : i32
    %c0_i32_0 = arith.constant 0 : i32
    return %arg0, %c0_i32 : i32, i32
  }
}

</mosaic_0001>

<bundles_post_ra>
// kernel: tpu_custom_call.1
= control target key start
LH: loop header
LB: loop body
LE: loop exit
PB: predicated region body
PF: predicated region fallthrough
CT: control target
= control target key end

     0   :  { %6 = vsyncpa [#allocation3], 0  ;;  %s134_s0 = inlined_call_operand.hbm [shape: f32[16,128], index: 0, kind: input, shape index: {}]   ;;  %s135_s1 = inlined_call_operand.hbm [shape: f32[16,128], index: 1, kind: output, shape index: {}]  }
   0x1   :  { %7 = vsyncpa [#allocation4], 0  ;;  %s96_s6 = smov [#allocation2]   ;;  %s48_s10 = scalar_lea.hbm %s134_s0, 256 }
   0x2   :  { %s13_s7 = sshll.u32 %s96_s6, 4  ;;  %p49_p0 = scmp.ne.s32.totalorder %s134_s0, %s48_s10  ;;  %s14_s7 = int_to_ptr.vmem [resolvable:$true] %s13_s7 }
   0x3   :  { %p52_p1 = scmp.lt.u32.totalorder %s48_s10, %s134_s0 }
   0x5   :  { %p54_p2 = pnand %p52_p1, %p49_p0 }
   0x7   :  { %57 = shalt.err (!%p54_p2)
}
   0x8   :  { %s58_s15 = scalar_lea.vmem %s14_s7, 256  ;;  %p63_p4 = scmp.lt.s32.totalorder %s14_s7, %s14_s7 }
   0x9   :  { %p59_p3 = scmp.ne.s32.totalorder %s14_s7, %s58_s15  ;;  %p64_p5 = scmp.lt.s32.totalorder %s58_s15, %s58_s15 }
   0xb   :  { %p65_p6 = por %p64_p5, %p63_p4 }
   0xd   :  { %p66_p7 = pnand %p65_p6, %p59_p3 }
   0xf   :  { %69 = shalt.err (!%p66_p7)
}
  0x10   :  { %s97_s16 = smov 128   ;;  %s98_s17 = smov 8  }
  0x11   :  { %19 = dma.hbm_to_vmem [thread:$0]  %s134_s0, 256, %s14_s7, [#allocation3], %s97_s16, %s97_s16, %s98_s17  }
  0x12   :  { %92 = dma.done.wait [#allocation3], 256  }
  0x13   :  { %93 = vsyncadd [#allocation3], 4294967040  ;;  %s99_s20 = smov [#allocation5]   ;;  %v23_v0 = vld [vmem:[#allocation2] sm:$0xff]  ;;  %v24_v1 = vld [vmem:[#allocation2 + $0x8] sm:$0xff] }
  0x14   :  { %s32_s21 = sshll.u32 %s99_s20, 4  ;;  %25 = vst [vmem:[#allocation5] sm:$0xff] %v23_v0  ;;  %26 = vst [vmem:[#allocation5 + $0x8] sm:$0xff] %v24_v1  ;;  %s33_s21 = int_to_ptr.vmem [resolvable:$true] %s32_s21 }
  0x15   :  { %s70_s22 = scalar_lea.vmem %s33_s21, 256  ;;  %p75_p9 = scmp.lt.s32.totalorder %s33_s21, %s33_s21 }
  0x16   :  { %p71_p8 = scmp.ne.s32.totalorder %s33_s21, %s70_s22  ;;  %p76_p10 = scmp.lt.s32.totalorder %s70_s22, %s70_s22 }
  0x18   :  { %p77_p11 = por %p76_p10, %p75_p9 }
  0x1a   :  { %p78_p12 = pnand %p77_p11, %p71_p8 }
  0x1c   :  { %81 = shalt.err (!%p78_p12)
}
  0x1d   :  { %s82_s0 = scalar_lea.hbm %s135_s1, 256 }
  0x1e   :  { %p83_p13 = scmp.ne.s32.totalorder %s135_s1, %s82_s0  ;;  %p86_p0 = scmp.lt.u32.totalorder %s82_s0, %s135_s1 }
  0x20   :  { %p88_p1 = pnand %p86_p0, %p83_p13 }
  0x22   :  { %91 = shalt.err (!%p88_p1)
}
  0x23   :  { %38 = dma.vmem_to_hbm [thread:$0]  %s33_s21, 256, %s135_s1, [#allocation4], %s97_s16, %s97_s16, %s98_s17  }
  0x24   :  { %94 = dma.done.wait [#allocation4], 256  }
  0x25   :  { %95 = vsyncadd [#allocation4], 4294967040 }
  0x26   :  { %42 = vsyncpa [#allocation3], 1 }
  0x27   :  { %43 = vsyncpa [#allocation4], 1 }

</bundles_post_ra>
